<compile_context>
chip_gen: v7x
topology: tpu7x:2x2x1
jax: 0.10.0
libtpu: 0.0.40
codegen_flags: <defaults>
</compile_context>

<pallas_src>
import functools

import numpy as np
import jax
import jax.numpy as jnp
from jax import lax
from jax.experimental import pallas as pl
from jax.experimental.pallas import tpu as pltpu


def _instance_loss_kernel(z_row_ref, z_col_ref, out_ref,
                          m_acc, l_acc, pos_acc, *, bsz, inv_temp):
    """One (row-tile r, column-tile c) step of the online NT-Xent loss."""
    r = pl.program_id(0)
    c = pl.program_id(1)
    num_c = pl.num_programs(1)

    tm = z_row_ref.shape[0]
    tn = z_col_ref.shape[0]

    @pl.when(c == 0)
    def _init():
        m_acc[...] = jnp.full_like(m_acc, jnp.finfo(jnp.float32).min)
        l_acc[...] = jnp.zeros_like(l_acc)
        pos_acc[...] = jnp.zeros_like(pos_acc)

    # Single MXU matmul: (TM, D) x (TN, D)^T contracting the last dims (no
    # explicit transpose), f32 accumulation. Temperature is folded into the
    # f32 result — more accurate than pre-scaling low-precision inputs.
    dn = (((1,), (1,)), ((), ()))
    sim = lax.dot_general(z_row_ref[...], z_col_ref[...], dn,
                          preferred_element_type=jnp.float32)       # (TM, TN)
    sim = sim * jnp.float32(inv_temp)

    # Local (row - col) index difference; equality tests against it are scalar
    # compares, shared between the self mask and the positive extraction.
    diff = (lax.broadcasted_iota(jnp.int32, (tm, tn), 0)
            - lax.broadcasted_iota(jnp.int32, (tm, tn), 1))
    delta = c * tn - r * tm            # (global col0) - (global row0)

    # Mask self-similarity (global row == global col) with -inf. Cheap VPU
    # filler hidden under the EUP exps; branch-free keeps the LSE robust.
    sim_m = jnp.where(diff == delta, -jnp.inf, sim)

    # Online (flash-style) logsumexp. m_new is always finite (each tile row has
    # at most one masked entry), so exp(finfo.min - m_new) == 0 at c == 0.
    m_prev = m_acc[...]
    m_new = jnp.maximum(m_prev, jnp.max(sim_m, axis=-1, keepdims=True))
    alpha = jnp.exp(m_prev - m_new)
    l_acc[...] = alpha * l_acc[...] + jnp.sum(jnp.exp(sim_m - m_new),
                                              axis=-1, keepdims=True)
    m_acc[...] = m_new

    # Positive (partner) logit sits at column == row +/- bsz. TM divides bsz,
    # so a row tile lies entirely in one half and the partner offset is a
    # per-tile constant. Only column tiles overlapping that shifted diagonal
    # pay for the extra select + cross-lane reduction (gated with pl.when).
    is_upper = (r + 1) * tm <= bsz
    shift = jnp.where(is_upper, bsz, -bsz)
    pos_delta = delta - shift
    pos_overlap = jnp.logical_and(pos_delta > -tn, pos_delta < tm)

    @pl.when(pos_overlap)
    def _accumulate_positive():
        pos_acc[...] += jnp.sum(jnp.where(diff == pos_delta, sim, 0.0),
                                axis=-1, keepdims=True)

    @pl.when(c == num_c - 1)
    def _finalize():
        lse = m_acc[...] + jnp.log(l_acc[...])
        out_ref[...] = lse - pos_acc[...]        # per-row cross-entropy terms


def _sublane_align(dtype):
    # f32 -> 8, bf16 -> 16, int8/fp8 -> 32 (sub-32-bit dtypes pack sublanes).
    return max(8, 32 // jnp.dtype(dtype).itemsize)


def _pick_tile(n, pref, dtype):
    """Largest divisor of n that is <= pref and a multiple of the sublane pack."""
    align = _sublane_align(dtype)
    t = min(pref, n)
    t -= t % align
    while t >= align:
        if n % t == 0:
            return t
        t -= align
    return n


def _vmem_estimate(tm, tn, d, itemsize):
    inputs = 2 * (tm + tn) * d * itemsize        # double-buffered row/col tiles
    sim = 2 * tm * tn * 4                        # f32 sim tile + spill slack
    small = 5 * tm * 128 * 4                     # (TM, 1) scratch/out, lane-padded
    return inputs + sim + small


def instance_loss(z_i, z_j, temperature, *, tm=512, tn=512,
                  vmem_budget_bytes=28 * 1024 * 1024):
    """Pallas TPU implementation of InstanceLoss.forward(z_i, z_j)."""
    assert z_i.shape == z_j.shape and z_i.ndim == 2
    B, D = z_i.shape
    assert B % 8 == 0, "batch_size must be a multiple of 8 (sublane alignment)"
    N = 2 * B

    # One-time O(N*D) concat; row tiles then need no per-step half select and
    # the column axis streams both halves with a single matmul per step.
    z = jnp.concatenate([z_i, z_j], axis=0)
    itemsize = jnp.dtype(z.dtype).itemsize

    # Row tiles must not straddle the half boundary (=> divisor of B); column
    # tiles may be any divisor of N. Prefer big tiles, then shrink (TN first)
    # until the double-buffered footprint fits the VMEM budget.
    TM = _pick_tile(B, tm, z.dtype)
    TN = _pick_tile(N, tn, z.dtype)
    align = _sublane_align(z.dtype)
    while _vmem_estimate(TM, TN, D, itemsize) > vmem_budget_bytes:
        if TN >= TM and TN > align:
            new_tn = _pick_tile(N, TN // 2, z.dtype)
            if new_tn >= TN:
                break
            TN = new_tn
        elif TM > align:
            new_tm = _pick_tile(B, TM // 2, z.dtype)
            if new_tm >= TM:
                break
            TM = new_tm
        else:
            break

    grid = (N // TM, N // TN)   # (row tiles [parallel], column tiles [reduction])

    kernel = functools.partial(_instance_loss_kernel, bsz=B,
                               inv_temp=1.0 / float(temperature))

    est = _vmem_estimate(TM, TN, D, itemsize)
    # Raise the scoped VMEM limit only when big tiles need it (safe on v5e/v6e
    # 128 MiB physical and under v7x's 64 MiB physical); small shapes keep the
    # platform defaults.
    vmem_limit = 48 * 1024 * 1024 if est > 12 * 1024 * 1024 else None

    cost = pl.CostEstimate(
        flops=2 * N * N * D,
        transcendentals=N * N,
        bytes_accessed=(N // TM) * N * D * itemsize + N * D * itemsize + N * 4,
    )

    per_row = pl.pallas_call(
        kernel,
        out_shape=jax.ShapeDtypeStruct((N, 1), jnp.float32),
        grid_spec=pltpu.PrefetchScalarGridSpec(
            num_scalar_prefetch=0,
            grid=grid,
            in_specs=[pl.BlockSpec((TM, D), lambda r, c: (r, 0)),
                      pl.BlockSpec((TN, D), lambda r, c: (c, 0))],
            out_specs=pl.BlockSpec((TM, 1), lambda r, c: (r, 0)),
            scratch_shapes=[pltpu.VMEM((TM, 1), jnp.float32)] * 3,
        ),
        compiler_params=pltpu.CompilerParams(
            dimension_semantics=("parallel", "arbitrary"),
            vmem_limit_bytes=vmem_limit),
        cost_estimate=cost,
    )(z, z)

    # Tiny final reduction (N scalars) + /N done by XLA.
    return jnp.sum(per_row) / N


def _reference_loss_numpy(z_i, z_j, temperature):
    """Direct NumPy port of the PyTorch forward pass (for verification)."""
    z_i = np.asarray(z_i, dtype=np.float64)
    z_j = np.asarray(z_j, dtype=np.float64)
    B = z_i.shape[0]
    N = 2 * B
    z = np.concatenate([z_i, z_j], axis=0)
    sim = (z @ z.T) / temperature

    sim_i_j = np.diagonal(sim, offset=B)
    sim_j_i = np.diagonal(sim, offset=-B)
    positive = np.concatenate([sim_i_j, sim_j_i]).reshape(N, 1)

    mask = np.ones((N, N), dtype=bool)
    np.fill_diagonal(mask, False)
    for i in range(B):
        mask[i, B + i] = False
        mask[B + i, i] = False
    negative = sim[mask].reshape(N, -1)

    logits = np.concatenate([positive, negative], axis=1)
    m = logits.max(axis=1, keepdims=True)
    lse = (m + np.log(np.exp(logits - m).sum(axis=1, keepdims=True)))[:, 0]
    loss = np.sum(lse - logits[:, 0]) / N
    return loss


if __name__ == "__main__":
    batch_size = 16
    dim = 64
    temperature = 0.5

    key = jax.random.PRNGKey(0)
    k1, k2 = jax.random.split(key)
    z_i = jax.random.normal(k1, (batch_size, dim), dtype=jnp.float32)
    z_j = jax.random.normal(k2, (batch_size, dim), dtype=jnp.float32)

    loss = instance_loss(z_i, z_j, temperature)
    loss = jax.block_until_ready(loss)

    ref = _reference_loss_numpy(z_i, z_j, temperature)
    np.testing.assert_allclose(np.asarray(loss), ref, rtol=1e-4, atol=1e-4)

    print("KERNEL_OK")
</pallas_src>

<mosaic_0001>
module attributes {stable_mosaic.version = 11 : i64} {
  func.func @_instance_loss_kernel(%arg0: i32, %arg1: i32, %arg2: memref<16x64xf32, #tpu.memory_space<vmem>>, %arg3: memref<32x64xf32, #tpu.memory_space<vmem>>, %arg4: memref<16x1xf32, #tpu.memory_space<vmem>>, %arg5: memref<16x1xf32, #tpu.memory_space<vmem>>, %arg6: memref<16x1xf32, #tpu.memory_space<vmem>>, %arg7: memref<16x1xf32, #tpu.memory_space<vmem>>) attributes {dimension_semantics = [#tpu.dimension_semantics<parallel>, #tpu.dimension_semantics<arbitrary>], iteration_bounds = array<i64: 2, 1>, scalar_prefetch = 0 : i64, scratch_operands = 3 : i64, tpu.core_type = #tpu.core_type<tc>, window_params = [{transform_indices = @transform_0, window_bounds = array<i64: 16, 64>}, {transform_indices = @transform_1, window_bounds = array<i64: 32, 64>}, {transform_indices = @transform_2, window_bounds = array<i64: 16, 1>}]} {
    %c0_i32 = arith.constant 0 : i32
    %0 = arith.cmpi eq, %arg1, %c0_i32 : i32
    %1 = arith.extui %0 : i1 to i32
    %c0_i32_0 = arith.constant 0 : i32
    %2 = arith.cmpi ne, %1, %c0_i32_0 : i32
    scf.if %2 {
      %cst_23 = arith.constant -3.40282347E+38 : f32
      %47 = vector.broadcast %cst_23 : f32 to vector<16x1xf32>
      %c0_24 = arith.constant 0 : index
      %c0_25 = arith.constant 0 : index
      %48 = vector.load %arg5[%c0_24, %c0_25] : memref<16x1xf32, #tpu.memory_space<vmem>>, vector<16x1xf32>
      tpu.vector_store %arg5[%c0_24, %c0_25], %47 {strides = array<i32>} : memref<16x1xf32, #tpu.memory_space<vmem>>, vector<16x1xf32>,
      %cst_26 = arith.constant 0.000000e+00 : f32
      %49 = vector.broadcast %cst_26 : f32 to vector<16x1xf32>
      %c0_27 = arith.constant 0 : index
      %c0_28 = arith.constant 0 : index
      %50 = vector.load %arg6[%c0_27, %c0_28] : memref<16x1xf32, #tpu.memory_space<vmem>>, vector<16x1xf32>
      tpu.vector_store %arg6[%c0_27, %c0_28], %49 {strides = array<i32>} : memref<16x1xf32, #tpu.memory_space<vmem>>, vector<16x1xf32>,
      %cst_29 = arith.constant 0.000000e+00 : f32
      %51 = vector.broadcast %cst_29 : f32 to vector<16x1xf32>
      %c0_30 = arith.constant 0 : index
      %c0_31 = arith.constant 0 : index
      %52 = vector.load %arg7[%c0_30, %c0_31] : memref<16x1xf32, #tpu.memory_space<vmem>>, vector<16x1xf32>
      tpu.vector_store %arg7[%c0_30, %c0_31], %51 {strides = array<i32>} : memref<16x1xf32, #tpu.memory_space<vmem>>, vector<16x1xf32>,
    } else {
    }
    %c0 = arith.constant 0 : index
    %c0_1 = arith.constant 0 : index
    %3 = vector.load %arg2[%c0, %c0_1] : memref<16x64xf32, #tpu.memory_space<vmem>>, vector<16x64xf32>
    %c0_2 = arith.constant 0 : index
    %c0_3 = arith.constant 0 : index
    %4 = vector.load %arg3[%c0_2, %c0_3] : memref<32x64xf32, #tpu.memory_space<vmem>>, vector<32x64xf32>
    %cst = arith.constant dense<0.000000e+00> : vector<16x32xf32>
    %5 = tpu.matmul %3, %4, %cst {dimension_numbers = #tpu.dot_dimension_numbers<[1], [1], [0], [0], [0, 0, 1, 0], [], []>} : vector<16x64xf32>, vector<32x64xf32>, vector<16x32xf32> -> vector<16x32xf32>
    %cst_4 = arith.constant 2.000000e+00 : f32
    %6 = vector.broadcast %cst_4 : f32 to vector<16x32xf32>
    %7 = arith.mulf %5, %6 : vector<16x32xf32>
    %8 = tpu.iota {dimensions = array<i32: 0>} : vector<16x32xi32>
    %9 = tpu.iota {dimensions = array<i32: 1>} : vector<16x32xi32>
    %10 = arith.subi %8, %9 : vector<16x32xi32>
    %c32_i32 = arith.constant 32 : i32
    %11 = arith.muli %arg1, %c32_i32 : i32
    %c16_i32 = arith.constant 16 : i32
    %12 = arith.muli %arg0, %c16_i32 : i32
    %13 = arith.subi %11, %12 : i32
    %14 = vector.broadcast %13 : i32 to vector<16x32xi32>
    %15 = arith.cmpi eq, %10, %14 : vector<16x32xi32>
    %cst_5 = arith.constant 0xFF800000 : f32
    %16 = vector.broadcast %cst_5 : f32 to vector<16x32xf32>
    %17 = arith.select %15, %16, %7 : vector<16x32xi1>, vector<16x32xf32>
    %c0_6 = arith.constant 0 : index
    %c0_7 = arith.constant 0 : index
    %18 = vector.load %arg5[%c0_6, %c0_7] : memref<16x1xf32, #tpu.memory_space<vmem>>, vector<16x1xf32>
    %cst_8 = arith.constant dense<0xFF800000> : vector<16xf32>
    %19 = vector.multi_reduction <maximumf>, %17, %cst_8 [1] : vector<16x32xf32> to vector<16xf32>
    %20 = vector.shape_cast %19 : vector<16xf32> to vector<16x1xf32>
    %21 = arith.maximumf %18, %20 : vector<16x1xf32>
    %22 = arith.subf %18, %21 : vector<16x1xf32>
    %23 = math.exp %22 : vector<16x1xf32>
    %c0_9 = arith.constant 0 : index
    %c0_10 = arith.constant 0 : index
    %24 = vector.load %arg6[%c0_9, %c0_10] : memref<16x1xf32, #tpu.memory_space<vmem>>, vector<16x1xf32>
    %25 = arith.mulf %23, %24 : vector<16x1xf32>
    %26 = vector.broadcast %21 : vector<16x1xf32> to vector<16x32xf32>
    %27 = arith.subf %17, %26 : vector<16x32xf32>
    %28 = math.exp %27 : vector<16x32xf32>
    %cst_11 = arith.constant dense<0.000000e+00> : vector<16xf32>
    %29 = vector.multi_reduction <add>, %28, %cst_11 [1] : vector<16x32xf32> to vector<16xf32>
    %30 = vector.shape_cast %29 : vector<16xf32> to vector<16x1xf32>
    %31 = arith.addf %25, %30 : vector<16x1xf32>
    %c0_12 = arith.constant 0 : index
    %c0_13 = arith.constant 0 : index
    %32 = vector.load %arg6[%c0_12, %c0_13] : memref<16x1xf32, #tpu.memory_space<vmem>>, vector<16x1xf32>
    tpu.vector_store %arg6[%c0_12, %c0_13], %31 {strides = array<i32>} : memref<16x1xf32, #tpu.memory_space<vmem>>, vector<16x1xf32>,
    %c0_14 = arith.constant 0 : index
    %c0_15 = arith.constant 0 : index
    %33 = vector.load %arg5[%c0_14, %c0_15] : memref<16x1xf32, #tpu.memory_space<vmem>>, vector<16x1xf32>
    tpu.vector_store %arg5[%c0_14, %c0_15], %21 {strides = array<i32>} : memref<16x1xf32, #tpu.memory_space<vmem>>, vector<16x1xf32>,
    %c1_i32 = arith.constant 1 : i32
    %34 = arith.addi %arg0, %c1_i32 : i32
    %c16_i32_16 = arith.constant 16 : i32
    %35 = arith.muli %34, %c16_i32_16 : i32
    %c16_i32_17 = arith.constant 16 : i32
    %36 = arith.cmpi sle, %35, %c16_i32_17 : i32
    %c16_i32_18 = arith.constant 16 : i32
    %c-16_i32 = arith.constant -16 : i32
    %37 = arith.select %36, %c16_i32_18, %c-16_i32 : i32
    %38 = arith.subi %13, %37 : i32
    %c-32_i32 = arith.constant -32 : i32
    %39 = arith.cmpi sgt, %38, %c-32_i32 : i32
    %c16_i32_19 = arith.constant 16 : i32
    %40 = arith.cmpi slt, %38, %c16_i32_19 : i32
    %41 = arith.andi %39, %40 : i1
    %42 = arith.extui %41 : i1 to i32
    %c0_i32_20 = arith.constant 0 : i32
    %43 = arith.cmpi ne, %42, %c0_i32_20 : i32
    scf.if %43 {
      %c0_23 = arith.constant 0 : index
      %c0_24 = arith.constant 0 : index
      %47 = vector.load %arg7[%c0_23, %c0_24] : memref<16x1xf32, #tpu.memory_space<vmem>>, vector<16x1xf32>
      %48 = vector.broadcast %38 : i32 to vector<16x32xi32>
      %49 = arith.cmpi eq, %10, %48 : vector<16x32xi32>
      %cst_25 = arith.constant 0.000000e+00 : f32
      %50 = vector.broadcast %cst_25 : f32 to vector<16x32xf32>
      %51 = arith.select %49, %7, %50 : vector<16x32xi1>, vector<16x32xf32>
      %cst_26 = arith.constant dense<0.000000e+00> : vector<16xf32>
      %52 = vector.multi_reduction <add>, %51, %cst_26 [1] : vector<16x32xf32> to vector<16xf32>
      %53 = vector.shape_cast %52 : vector<16xf32> to vector<16x1xf32>
      %54 = arith.addf %47, %53 : vector<16x1xf32>
      %c0_27 = arith.constant 0 : index
      %c0_28 = arith.constant 0 : index
      %55 = vector.load %arg7[%c0_27, %c0_28] : memref<16x1xf32, #tpu.memory_space<vmem>>, vector<16x1xf32>
      tpu.vector_store %arg7[%c0_27, %c0_28], %54 {strides = array<i32>} : memref<16x1xf32, #tpu.memory_space<vmem>>, vector<16x1xf32>,
    } else {
    }
    %c0_i32_21 = arith.constant 0 : i32
    %44 = arith.cmpi eq, %arg1, %c0_i32_21 : i32
    %45 = arith.extui %44 : i1 to i32
    %c0_i32_22 = arith.constant 0 : i32
    %46 = arith.cmpi ne, %45, %c0_i32_22 : i32
    scf.if %46 {
      %c0_23 = arith.constant 0 : index
      %c0_24 = arith.constant 0 : index
      %47 = vector.load %arg5[%c0_23, %c0_24] : memref<16x1xf32, #tpu.memory_space<vmem>>, vector<16x1xf32>
      %c0_25 = arith.constant 0 : index
      %c0_26 = arith.constant 0 : index
      %48 = vector.load %arg6[%c0_25, %c0_26] : memref<16x1xf32, #tpu.memory_space<vmem>>, vector<16x1xf32>
      %49 = math.log %48 : vector<16x1xf32>
      %50 = arith.addf %47, %49 : vector<16x1xf32>
      %c0_27 = arith.constant 0 : index
      %c0_28 = arith.constant 0 : index
      %51 = vector.load %arg7[%c0_27, %c0_28] : memref<16x1xf32, #tpu.memory_space<vmem>>, vector<16x1xf32>
      %52 = arith.subf %50, %51 : vector<16x1xf32>
      %c0_29 = arith.constant 0 : index
      %c0_30 = arith.constant 0 : index
      %53 = vector.load %arg4[%c0_29, %c0_30] : memref<16x1xf32, #tpu.memory_space<vmem>>, vector<16x1xf32>
      tpu.vector_store %arg4[%c0_29, %c0_30], %52 {strides = array<i32>} : memref<16x1xf32, #tpu.memory_space<vmem>>, vector<16x1xf32>,
    } else {
    }
    return
  }
  func.func @transform_0(%arg0: i32, %arg1: i32) -> (i32, i32) {
    %c0_i32 = arith.constant 0 : i32
    %c0_i32_0 = arith.constant 0 : i32
    return %arg0, %c0_i32 : i32, i32
  }
  func.func @transform_1(%arg0: i32, %arg1: i32) -> (i32, i32) {
    %c0_i32 = arith.constant 0 : i32
    %c0_i32_0 = arith.constant 0 : i32
    return %arg1, %c0_i32 : i32, i32
  }
  func.func @transform_2(%arg0: i32, %arg1: i32) -> (i32, i32) {
    %c0_i32 = arith.constant 0 : i32
    %c0_i32_0 = arith.constant 0 : i32
    return %arg0, %c0_i32 : i32, i32
  }
}

</mosaic_0001>

<bundles_post_ra>
// kernel: tpu_custom_call.1
= control target key start
LH: loop header
LB: loop body
LE: loop exit
PB: predicated region body
PF: predicated region fallthrough
CT: control target
= control target key end

     0   :  { %7 = vsyncpa [#allocation6], 0  ;;  %s1010_s0 = inlined_call_operand.hbm [shape: f32[32,64], index: 0, kind: input, shape index: {}]   ;;  %s1011_s1 = inlined_call_operand.hbm [shape: f32[32,64], index: 1, kind: input, shape index: {}]   ;;  %s1012_s2 = inlined_call_operand.vmem [shape: f32[32,1], index: 2, kind: output, shape index: {}]  }
   0x1   :  { %9 = vsyncpa [#allocation6 + $0x1], 0 }
   0x2   :  { %10 = vsyncpa [#allocation8], 0  ;;  %s791_s9 = smov 0   ;;  %s793_s10 = smov 0  }
   0x3   :  { %s795_s11 = smov 0   ;;  %s797_s12 = smov 0  }
   0x4   :  { %s799_s13 = smov 0   ;;  %s801_s14 = smov 0  }
   0x5 LB: > { %s515_s15 = sadd.s32 4294967295, %s767_s14   ;;  %p48_p0 = scmp.ne.s32.totalorder %s751_s10, %s747_s9  ;;  %s767_s14 = sphi %s801_s14, %s16_s14   ;;  %s763_s13 = sphi %s799_s13, %s1030_s13   ;;  %s759_s12 = sphi %s797_s12, %s1029_s12   ;;  %s755_s11 = sphi %s795_s11, %s1028_s11   ;;  %s751_s10 = sphi %s793_s10, %s1027_s10   ;;  %s747_s9 = sphi %s791_s9, %s1026_s9  }
   0x6   : > { %p821_p1 = scmp.eq.s32.totalorder %s515_s15, 0  ;;  %p517_p2 = scmp.ge.s32.totalorder %s767_s14, 1 }
   0x7   : > { %p111_p3 = scmp.lt.s32.totalorder %s767_s14, 3  ;;  %s769_s19 = smov [#allocation7]  }
   0x8   : > { %s1017_s16 = scalar_select %p821_p1, 1, 0 }
   0x9   : > { %p829_p4 = por %p821_p1, %p48_p0  ;;  %p833_p5 = pnand %p517_p2, %p111_p3 }
   0xa   : > { %s126_s20 = sshll.u32 %s769_s19, 4  ;;  %s28_s22 = sadd.s32 1, %s763_s13  ;;  %s127_s20 = int_to_ptr.vmem [resolvable:$true] %s126_s20 }
   0xb   : > { %s1018_s17 = scalar_select %p829_p4, 1, 0 }
   0xc   : > { %s1019_s18 = scalar_select %p833_p5, 1, 0 }
   0xd   : > { %p576_p6 = pneg %p833_p5  ;;  %s655_s25 = scalar_lea.hbm %s1011_s1, 512 }
   0xe   : > { %p656_p8 = scmp.ne.s32.totalorder %s1011_s1, %s655_s25  ;;  %p662_p12 = scmp.lt.u32.totalorder %s655_s25, %s1011_s1 }
   0xf   : > { %p841_p7 = pnand %p576_p6, %p821_p1 }
  0x11   : > { %p657_p9 = pneg %p841_p7 }
  0x13   : > { %p658_p10 = pnand %p657_p9, %p656_p8 }
  0x15   : > { %p659_p11 = pneg %p658_p10 }
  0x17   : > { %p664_p13 = pnand %p662_p12, %p659_p11 }
  0x19   : > { %667 = shalt.err (!%p664_p13)
}
  0x1a   : > { %s668_s30 = scalar_lea.vmem %s127_s20, 512  ;;  %p676_p6 = scmp.lt.s32.totalorder %s127_s20, %s127_s20 }
  0x1b   : > { %p669_p0 = scmp.ne.s32.totalorder %s127_s20, %s668_s30  ;;  %p677_p1 = scmp.lt.s32.totalorder %s668_s30, %s668_s30 }
  0x1d   : > { %p671_p2 = pnand %p669_p0, %p657_p9  ;;  %p678_p4 = por %p677_p1, %p676_p6 }
  0x1f   : > { %p672_p3 = pneg %p671_p2 }
  0x21   : > { %p679_p5 = pnand %p678_p4, %p672_p3 }
  0x23   : > { %682 = shalt.err (!%p679_p5)
}
  0x24   : > { %s770_s3 = smov 128   ;;  %s771_s4 = smov 8  }
  0x25   : > { %579 = dma.hbm_to_vmem [thread:$0]  (!%p841_p7), %s1011_s1, 512, %s127_s20, [#allocation8], %s770_s3, %s770_s3, %s771_s4  }
  0x26   : > { %p30_p1 = scmp.ge.s32.totalorder %s28_s22, 2  ;;  %s35_s7 = sadd.s32 1, %s755_s11 }
  0x27   : > { %p42_p4 = scmp.ne.s32.totalorder %s755_s11, %s751_s10  ;;  %p43_p5 = scmp.eq.s32.totalorder %s767_s14, 0 }
  0x28   : > { %s1032_s22 = smov (%p30_p1, %s28_s22), 0  ;;  %p585_p9 = scmp.lt.s32.totalorder %s767_s14, 2 }
  0x29   : > { %p44_p8 = por %p43_p5, %p42_p4  ;;  %s32_s8 = ssub.s32 %s763_s13, %s1032_s22 }
  0x2a   : > { %s140_s9 = sand.u32 1, %s755_s11   ;;  %p33_p10 = scmp.eq.s32.totalorder %s32_s8, 0 }
  0x2b   : > { %s520_s15 = sshll.u32 %s140_s9, 4  ;;  %s538_s19 = sshll.u32 %s763_s13, 8 }
  0x2c   : > { %s877_s21 = scalar_select %p33_p10, %s755_s11, %s35_s7  }
  0x2d   : > { %s882_s20 = scalar_lea.hbm %s1010_s0, %s538_s19  ;;  %s144_s25 = scalar_lea.vmem [#allocation5], %s520_s15 }
  0x2e   : > { %s151_s26 = sshll.u32 %s144_s25, 4  ;;  %p884_p7 = pnand %p585_p9, %p44_p8  ;;  %s888_s26 = int_to_ptr.vmem [resolvable:$true] %s151_s26 }
  0x2f   : > { %s890_s28 = scalar_lea.sflag [#allocation6], %s140_s9  ;;  %s683_s29 = scalar_lea.hbm %s882_s20, 256 }
  0x30   : > { %p684_p11 = scmp.ne.s32.totalorder %s882_s20, %s683_s29  ;;  %p685_p12 = pneg %p884_p7 }
  0x31   : > { %s688_s6 = scalar_lea.hbm %s1010_s0, 512  ;;  %p689_p2 = scmp.lt.u32.totalorder %s882_s20, %s1010_s0 }
  0x32   : > { %p686_p13 = pnand %p685_p12, %p684_p11  ;;  %p690_p3 = scmp.lt.u32.totalorder %s688_s6, %s683_s29 }
  0x33   : > { %p692_p1 = scmp.lt.u32.totalorder %s683_s29, %s882_s20 }
  0x34   : > { %p687_p0 = pneg %p686_p13  ;;  %p691_p6 = por %p690_p3, %p689_p2 }
  0x36   : > { %p693_p4 = por %p692_p1, %p691_p6 }
  0x38   : > { %p694_p5 = pnand %p693_p4, %p687_p0 }
  0x3a   : > { %697 = shalt.err (!%p694_p5)
}
  0x3b   : > { %s698_s9 = scalar_lea.vmem %s888_s26, 256  ;;  %s772_s15 = smov [#allocation5]  }
  0x3c   : > { %p699_p8 = scmp.ne.s32.totalorder %s888_s26, %s698_s9  ;;  %s703_s19 = sshll.u32 %s772_s15, 4  ;;  %s704_s19 = int_to_ptr.vmem [resolvable:$false] %s703_s19 }
  0x3d   : > { %s705_s23 = scalar_lea.vmem %s704_s19, 512  ;;  %p706_p11 = scmp.lt.s32.totalorder %s888_s26, %s704_s19 }
  0x3e   : > { %p701_p9 = pnand %p699_p8, %p685_p12  ;;  %p707_p13 = scmp.lt.s32.totalorder %s705_s23, %s698_s9 }
  0x40   : > { %p702_p10 = pneg %p701_p9  ;;  %p708_p2 = por %p707_p13, %p706_p11 }
  0x42   : > { %p709_p3 = pnand %p708_p2, %p702_p10 }
  0x44   : > { %712 = shalt.err (!%p709_p3)
}
  0x45   : > { %583 = dma.hbm_to_vmem [thread:$0]  (!%p884_p7), %s882_s20, 256, %s888_s26, %s890_s28, %s770_s3, %s770_s3, %s771_s4  }
  0x46   : > { %p1022_p12 = scmp.ne.s32.totalorder %s1019_s18, 0 }
  0x47   : > { %s165_s24 = sand.u32 (!%p1022_p12), 1, %s751_s10   ;;  %p1023_p0 = scmp.ne.s32.totalorder (!%p1022_p12), %s1018_s17, 0 }
  0x48   : > { %163 = sbr.rel (%p1022_p12) target bundleno = 785 (0x311), region = 28  ;;  %s524_s25 = sshll.u32 (!%p1022_p12), %s165_s24, 4 }
  0x49   : > { %s166_s29 = scalar_lea.sflag (!%p1022_p12), [#allocation6], %s165_s24  ;;  %s169_s30 = scalar_lea.vmem (!%p1022_p12), [#allocation5], %s524_s25 }
  0x4f   : > { %738 = dma.done.wait (%p1023_p0), %s166_s29, 256  }
  0x50   : > { %740 = vsyncadd (%p1023_p0), %s166_s29, 4294967040  ;;  %p1024_p6 = scmp.ne.s32.totalorder %s1017_s16, 0 }
  0x52   : > { %742 = dma.done.wait (%p1024_p6), [#allocation8], 512  }
  0x53   : > { %744 = vsyncadd (%p1024_p6), [#allocation8], 4294966784  ;;  %s526_s18 = sshll.u32 %s759_s12, 1  ;;  %vm219_vm0 = vcmask 523264   ;;  %v215_v0 = vld [vmem:[#allocation7] sm:$0xff]  ;;  %v216_v1 = vld [vmem:[#allocation7 + $0x8] sm:$0xff]  ;;  %v315_v9 = vlaneseq }
  0x54   : > { %p197_p7 = scmp.lt.s32.totalorder %s526_s18, 3  ;;  %vm559_vm1 = vmpackc.low %vm219_vm0, %vm219_vm0  ;;  %v217_v2 = vld [vmem:[#allocation7 + $0x10] sm:$0xff]  ;;  %v558_v3 = vpack.c.bf16 %v216_v1, %v215_v0  ;;  %v218_v4 = vld [vmem:[#allocation7 + $0x18] sm:$0xff]  ;;  %s534_s16 = sshll.u32 %s759_s12, 4  ;;  %vm206_vm2 = vcmask 7168   ;;  %vm332_vm4 = vcmask 261120  }
  0x55   : > { %v213_v5 = vld [vmem:[%s169_s30] sm:$0xff]  ;;  %v564_v6 = vpack.c.bf16 %v218_v4, %v217_v2  ;;  %v214_v7 = vld [vmem:[%s169_s30 + $0x8] sm:$0xff]  ;;  %s540_s17 = sadd.s32 16, %s534_s16  ;;  %s324_s28 = ssub.s32 0, %s534_s16  ;;  %v773_v8 = vmov -3.4028235e+38  }
  0x56   : > { %s1034_s18 = smov (!%p197_p7, %s526_s18), 3  ;;  %555 = vmatprep.mubr.msk.f32.mxu0 %vm219_vm0, %v213_v5  ;;  %560 = vmatprep.subr.msk.bf16.mxu0 %vm559_vm1, %v558_v3  ;;  %p382_p1 = scmp.le.s32.totalorder %s540_s17, 16  ;;  %207 = vst.msk [vmem:[#allocation2] sm:$0xff] %vm206_vm2, %v773_v8  ;;  %208 = vst.msk [vmem:[#allocation2 + $0x8] sm:$0xff] %vm206_vm2, %v773_v8  ;;  %v316_v10 = vshrl.u32 %v315_v9, 7  ;;  %v319_v11 = vand.u32 127, %v315_v9  ;;  %v325_v14 = vstv %s324_s28 }
  0x57   : > { %s527_s3 = sshll.u32 %s1034_s18, 3  ;;  %563 = vmatpush3.bf16.xpose.msk.msra.mxu0 %vm559_vm1, %v558_v3  ;;  %v774_v24 = vmov 0   ;;  %v775_v25 = vmov 0.0  }
  0x58   : > { %s936_s26 = scalar_lea.vmem %s1012_s2, %s527_s3  ;;  %566 = vmatprep.subr.msk.bf16.mxu0 %vm559_vm1, %v564_v6  ;;  %v317_v12 = vadd.s32 8, %v316_v10  ;;  %v953_v13 = vsub.s32 %v316_v10, %v319_v11  ;;  %641 = vset.pattern.permute.xlu1 %v774_v24  ;;  %209 = vst.msk [vmem:[#allocation3] sm:$0xff] %vm206_vm2, %v775_v25  ;;  %211 = vst.msk [vmem:[#allocation4] sm:$0xff] %vm206_vm2, %v775_v25 }
  0x59   : > { %s383_s27 = scalar_select %p382_p1, 16, 4294967280  ;;  %642 = vset.pattern.permute.xlu0 %v774_v24  ;;  %212 = vst.msk [vmem:[#allocation4 + $0x8] sm:$0xff] %vm206_vm2, %v775_v25  ;;  %210 = vst.msk [vmem:[#allocation3 + $0x8] sm:$0xff] %vm206_vm2, %v775_v25 }
  0x5a   : > { %v955_v15 = vsub.s32 %v317_v12, %v319_v11  ;;  %vm326_vm3 = vcmp.eq.s32.totalorder %v953_v13, %v325_v14 }
  0x5b   : > { %s943_s5 = ssub.s32 %s324_s28, %s383_s27 }
  0x5c   : > { %p385_p4 = scmp.gt.s32.totalorder %s943_s5, 4294967264  ;;  %p386_p5 = scmp.lt.s32.totalorder %s943_s5, 16  ;;  %vm327_vm5 = vcmp.eq.s32.totalorder %v955_v15, %v325_v14 }
  0x5d   : > { %v330_v26 = vld [vmem:[#allocation2] sm:$0xff]  ;;  %v331_v29 = vld [vmem:[#allocation2 + $0x8] sm:$0xff] }
  0x5e   : > { %p949_p8 = pnand %p386_p5, %p385_p4 }
  0x5f   : > { %569 = vmatpush3.bf16.xpose.msk.msra.mxu0 %vm559_vm1, %v564_v6  ;;  %v347_v47 = vld [vmem:[#allocation3] sm:$0xff]  ;;  %v393_v56 = vstv (!%p949_p8), %s943_s5  ;;  %v391_v61 = vld [vmem:[#allocation4] sm:$0xff] (!%p949_p8) }
  0x60   : > { %v348_v51 = vld [vmem:[#allocation3 + $0x8] sm:$0xff]  ;;  %vm394_vm6 = vcmp.eq.s32.totalorder (!%p949_p8), %v953_v13, %v393_v56  ;;  %vm395_vm7 = vcmp.eq.s32.totalorder (!%p949_p8), %v955_v15, %v393_v56  ;;  %v392_v0 = vld [vmem:[#allocation4 + $0x8] sm:$0xff] (!%p949_p8) }
  0x66   : > { %556 = vmatmul.mubr.msk.f32.vlgmr.msra.gmra.mrb[0].mxu0 %vm219_vm0, %v214_v7 }
 0x139   : > { %v557_v16 = vpop.f32.mrb[0].mxu0 }
 0x13a   : > { %v304_v17 = vpop.f32.mrb[1].mxu0  ;;  %v958_v18 = vmul.f32 2.0, %v557_v16 }
 0x13b   : > { %v960_v19 = vmul.f32 2.0, %v304_v17 }
 0x13c   : > { %v329_v22 = vsel %vm327_vm5, -inf, %v958_v18  ;;  %v397_v58 = vsel (!%p949_p8), %vm395_vm7, %v958_v18, 0.0 }
 0x13d   : > { %v328_v20 = vsel %vm326_vm3, -inf, %v960_v19  ;;  %v336_v23 = vsel %vm332_vm4, %v329_v22, -inf  ;;  %v396_v57 = vsel (!%p949_p8), %vm394_vm6, %v960_v19, 0.0  ;;  %v401_v60 = vsel (!%p949_p8), %vm332_vm4, %v397_v58, 0.0 }
 0x13e   : > { %v333_v21 = vsel %vm332_vm4, %v328_v20, -inf  ;;  %v398_v59 = vsel (!%p949_p8), %vm332_vm4, %v396_v57, 0.0 }
 0x13f   : > { %334 = vmax.xlane.f32.xlu0 %v333_v21 }
 0x143   : > { %337 = vmax.xlane.f32.xlu0 %v336_v23 }
 0x1cc   : > { %v335_v27 = vpop.xlane.xlu0 %334 }
 0x1cd   : > { %v339_v28 = vmax.f32 %v330_v26, %v335_v27 }
 0x1cf   : > { %v341_v30 = vsub.f32 %v330_v26, %v339_v28  ;;  %378 = vst.msk [vmem:[#allocation2] sm:$0xff] %vm206_vm2, %v339_v28  ;;  %353 = vperm.xlu1 %641, %v339_v28  }
 0x1d0   : > { %v338_v31 = vpop.xlane.xlu0 %337 }
 0x1d1   : > { %v340_v32 = vmax.f32 %v331_v29, %v338_v31  ;;  %v343_v44 = vmul.f32 1.442695, %v341_v30 }
 0x1d3   : > { %v342_v33 = vsub.f32 %v331_v29, %v340_v32  ;;  %379 = vst.msk [vmem:[#allocation2 + $0x8] sm:$0xff] %vm206_vm2, %v340_v32  ;;  %358 = vperm.xlu1 %641, %v340_v32  }
 0x1d5   : > { %v345_v45 = vmul.f32 1.442695, %v342_v33 }
 0x24e   : > { %v354_v34 = vpop.permute.xlu1 %353 }
 0x24f   : > { %v361_v35 = vsub.f32 %v328_v20, %v354_v34 }
 0x251   : > { %v363_v36 = vmul.f32 1.442695, %v361_v35 }
 0x252   : > { %v359_v37 = vpop.permute.xlu1 %358 }
 0x253   : > { %643 = vpow2.f32 %v363_v36  ;;  %v362_v38 = vsub.f32 %v329_v22, %v359_v37 }
 0x255   : > { %v365_v39 = vmul.f32 1.442695, %v362_v38 }
 0x257   : > { %645 = vpow2.f32 %v365_v39 }
 0x258   : > { %647 = vpow2.f32 %v343_v44 }
 0x259   : > { %649 = vpow2.f32 %v345_v45 }
 0x25d   : > { %v644_v40 = vpop.eup %643 }
 0x25e   : > { %v367_v41 = vsel %vm332_vm4, %v644_v40, 0.0 }
 0x25f   : > { %368 = vadd.xlane.f32.xlu0 %v367_v41 }
 0x261   : > { %v646_v42 = vpop.eup %645 }
 0x262   : > { %v370_v43 = vsel %vm332_vm4, %v646_v42, 0.0  ;;  %v648_v46 = vpop.eup %647 }
 0x263   : > { %371 = vadd.xlane.f32.xlu1 %v370_v43  ;;  %v349_v48 = vmul.f32 %v648_v46, %v347_v47  ;;  %v650_v49 = vpop.eup %649  ;;  %399 = vadd.xlane.f32.xlu0 (!%p949_p8), %v398_v59 }
 0x264   : > { %v350_v53 = vmul.f32 %v650_v49, %v348_v51 }
 0x267   : > { %402 = vadd.xlane.f32.xlu0 (!%p949_p8), %v401_v60 }
 0x2ec   : > { %v369_v50 = vpop.xlane.xlu0 %368 }
 0x2ed   : > { %v373_v52 = vadd.f32 %v369_v50, %v349_v48  ;;  %390 = sbr.rel (%p949_p8) target bundleno = 760 (0x2f8), region = 44 }
 0x2ef   : > { %376 = vst.msk [vmem:[#allocation3] sm:$0xff] %vm206_vm2, %v373_v52 }
 0x2f0   : > { %v372_v54 = vpop.xlane.xlu1 %371  ;;  %v400_v62 = vpop.xlane.xlu0 (!%p949_p8), %399 }
 0x2f1   : > { %v374_v55 = vadd.f32 %v372_v54, %v350_v53  ;;  %v404_v63 = vadd.f32 (!%p949_p8), %v400_v62, %v391_v61 }
 0x2f3   : > { %377 = vst.msk [vmem:[#allocation3 + $0x8] sm:$0xff] %vm206_vm2, %v374_v55  ;;  %406 = vst.msk [vmem:[#allocation4] sm:$0xff] (!%p949_p8), %vm206_vm2, %v404_v63 }
 0x2f4   : > { %v403_v1 = vpop.xlane.xlu0 %402 }
 0x2f5   : > { %v405_v2 = vadd.f32 %v403_v1, %v392_v0 }
 0x2f7   : > { %407 = vst.msk [vmem:[#allocation4 + $0x8] sm:$0xff] %vm206_vm2, %v405_v2 }
 0x2f8 PF: > { %v411_v6 = vld [vmem:[#allocation2] sm:$0xff]  ;;  %v412_v9 = vld [vmem:[#allocation2 + $0x8] sm:$0xff] }
 0x2fa   : > { %v413_v3 = vld [vmem:[#allocation3] sm:$0xff] }
 0x2fb   : > { %651 = vlog2.f32 %v413_v3 }
 0x2fe   : > { %v414_v4 = vld [vmem:[#allocation3 + $0x8] sm:$0xff]  ;;  %v421_v10 = vld [vmem:[#allocation4] sm:$0xff]  ;;  %v422_v13 = vld [vmem:[#allocation4 + $0x8] sm:$0xff] }
 0x2ff   : > { %653 = vlog2.f32 %v414_v4 }
 0x305   : > { %v652_v5 = vpop.eup %651 }
 0x306   : > { %v416_v8 = vmul.f32 0.6931472, %v652_v5 }
 0x308   : > { %v419_v12 = vadd.f32 %v416_v8, %v411_v6 }
 0x309   : > { %v654_v7 = vpop.eup %653 }
 0x30a   : > { %v418_v11 = vmul.f32 0.6931472, %v654_v7  ;;  %v423_v15 = vsub.f32 %v419_v12, %v421_v10 }
 0x30c   : > { %v420_v14 = vadd.f32 %v418_v11, %v412_v9  ;;  %425 = vst.msk [vmem:[%s936_s26] sm:$0xff] %vm206_vm2, %v423_v15 }
 0x30e   : > { %v424_v16 = vsub.f32 %v420_v14, %v422_v13 }
 0x310   : > { %426 = vst.msk [vmem:[%s936_s26 + $0x8] sm:$0xff] %vm206_vm2, %v424_v16 }
 0x311 PF: > { %s16_s14 = sadd.s32 1, %s767_s14   ;;  %s1026_s9 = smov %s751_s10 }
 0x312   : > { %p13_p9 = scmp.ge.s32.totalorder %s16_s14, 4   ;;  %s1027_s10 = smov %s755_s11 }
 0x313   : > { %s1028_s11 = smov %s877_s21  ;;  %s1029_s12 = smov %s763_s13 }
 0x314   : > { %s1030_s13 = smov %s1032_s22  ;;  %15 = sbr.rel (!%p13_p9) target bundleno = 5 (0x5), region = 85 }
 0x31b   :  { %449 = vsyncpa [#allocation6], 1 }
 0x31c   :  { %451 = vsyncpa [#allocation6 + $0x1], 1 }
 0x31d   :  { %452 = vsyncpa [#allocation8], 1 }

</bundles_post_ra>
